<compile_context>
chip_gen: v7x
topology: tpu7x:2x2x1
jax: 0.10.0
libtpu: 0.0.40
codegen_flags: <defaults>
</compile_context>

<pallas_src>
import functools

import jax
import jax.numpy as jnp
from jax import lax
from jax.experimental import pallas as pl
from jax.experimental.pallas import tpu as pltpu

# ----------------------------- tiny config ---------------------------------
VOCAB = 128
HIDDEN = 64
N_HEADS = 4
N_KV_HEADS = 2
HEAD_DIM = HIDDEN // N_HEADS            # 16
INTERMEDIATE = 128
N_LAYERS = 2
RMS_EPS = 1e-6
ROPE_THETA = 10000.0
SEQ = 8

Q_SIZE = N_HEADS * HEAD_DIM             # 64
KV_SIZE = N_KV_HEADS * HEAD_DIM         # 32
QKV_PACK = 2 * Q_SIZE + 4 * KV_SIZE     # 256 = [q*s | k | v | q_rot*s | k_rot | pad]
GU_PACK = 2 * INTERMEDIATE              # 256 = [gate | up]
COSSIN_PACK = 2 * Q_SIZE + 2 * KV_SIZE  # 192 = [cos_q | sin_q | cos_k | sin_k]


# ----------------------------- fused Pallas kernel --------------------------
def _fused_forward_kernel(emb_ref, cossin_ref, ln1_ref, ln2_ref,
                          wqkv_ref, wo_ref, wgu_ref, wd_ref,
                          fnorm_ref, lmhead_ref,
                          hid_out_ref, logits_ref,
                          x_sc,
                          *, eps, n_heads, n_kv_heads, head_dim,
                          q_size, kv_size, inter):
    """One grid step == one decoder layer; epilogue on the last step."""
    f32 = jnp.float32
    bf16 = jnp.bfloat16
    layer = pl.program_id(0)

    # Residual-stream value x = hidden + residual (layer 0: x = embedded tokens).
    @pl.when(layer == 0)
    def _():
        x_sc[...] = emb_ref[...].astype(f32)

    x = x_sc[...]                                      # (T, H) f32
    T = x.shape[0]
    H = x.shape[1]
    D = head_dim
    Q = q_size
    KV = kv_size

    # ---- input_layernorm (RMSNorm stats in f32) ----
    n1 = x * lax.rsqrt(jnp.mean(x * x, axis=-1, keepdims=True) + eps)
    n1 = (n1 * ln1_ref[...].astype(f32)).astype(bf16)

    # ---- packed projection: [q*scale | k | v | q_rot*scale | k_rot | pad] ----
    qkvr = jnp.dot(n1, wqkv_ref[...], preferred_element_type=f32)   # (T, 256) f32

    q_lin = qkvr[:, :Q]
    k_lin = qkvr[:, Q:Q + KV]
    v = qkvr[:, Q + KV:Q + 2 * KV]
    q_rot = qkvr[:, Q + 2 * KV:2 * Q + 2 * KV]
    k_rot = qkvr[:, 2 * Q + 2 * KV:2 * Q + 3 * KV]

    cos_q = cossin_ref[:, :Q]
    sin_q = cossin_ref[:, Q:2 * Q]
    cos_k = cossin_ref[:, 2 * Q:2 * Q + KV]
    sin_k = cossin_ref[:, 2 * Q + KV:2 * Q + 2 * KV]

    # RoPE: rotation matrix + softmax scale already folded into the weights.
    q = q_lin * cos_q + q_rot * sin_q                  # (T, Q) f32, pre-scaled
    k = k_lin * cos_k + k_rot * sin_k                  # (T, KV) f32

    # ---- causal GQA attention, batched per kv group ----
    rep = n_heads // n_kv_heads
    rows = lax.broadcasted_iota(jnp.int32, (rep * T, T), 0)
    cols = lax.broadcasted_iota(jnp.int32, (rep * T, T), 1)
    causal = cols <= (rows % T)

    k_bf = k.astype(bf16)
    v_bf = v.astype(bf16)
    wo = wo_ref[...]                                   # (Q, H) bf16

    attn_out = jnp.zeros((T, H), f32)
    for g in range(n_kv_heads):
        # Stack this group's rep q-heads along sublanes -> one fat scores matmul.
        qg = jnp.concatenate(
            [q[:, (g * rep + r) * D:(g * rep + r + 1) * D] for r in range(rep)],
            axis=0).astype(bf16)                       # (rep*T, D)
        kh = k_bf[:, g * D:(g + 1) * D]                # (T, D)
        vh = v_bf[:, g * D:(g + 1) * D]                # (T, D)

        s = lax.dot_general(qg, kh, (((1,), (1,)), ((), ())),
                            preferred_element_type=f32)      # (rep*T, T) f32
        s = jnp.where(causal, s, -1e30)
        p = jnp.exp(s - jnp.max(s, axis=-1, keepdims=True))
        p = p * pl.reciprocal(jnp.sum(p, axis=-1, keepdims=True), approx=True)
        ov = jnp.dot(p.astype(bf16), vh, preferred_element_type=f32)  # (rep*T, D) f32

        # Accumulate each head's output directly into the o_proj result.
        for r in range(rep):
            h = g * rep + r
            attn_out = attn_out + jnp.dot(
                ov[r * T:(r + 1) * T].astype(bf16),
                wo[h * D:(h + 1) * D, :],
                preferred_element_type=f32)            # (T, H) f32

    # ---- post_attention_layernorm (fused residual add) ----
    x2 = x + attn_out
    n2 = x2 * lax.rsqrt(jnp.mean(x2 * x2, axis=-1, keepdims=True) + eps)
    n2 = (n2 * ln2_ref[...].astype(f32)).astype(bf16)

    # ---- MLP: packed [gate|up] matmul -> SiLU(gate)*up -> down_proj ----
    gu = jnp.dot(n2, wgu_ref[...], preferred_element_type=f32)       # (T, 2*I) f32
    gate = gu[:, :inter]
    up = gu[:, inter:]
    act = (gate * jax.nn.sigmoid(gate)) * up
    mlp = jnp.dot(act.astype(bf16), wd_ref[...], preferred_element_type=f32)

    x_new = x2 + mlp                                   # next layer's (hidden + residual)
    x_sc[...] = x_new

    # ---- epilogue: final RMSNorm + tied lm_head logits ----
    @pl.when(layer == pl.num_programs(0) - 1)
    def _():
        nf = x_new * lax.rsqrt(jnp.mean(x_new * x_new, axis=-1, keepdims=True) + eps)
        nf = nf * fnorm_ref[...].astype(f32)
        hid_out_ref[...] = nf.astype(hid_out_ref.dtype)
        logits_ref[...] = jnp.dot(nf.astype(bf16), lmhead_ref[...],
                                  preferred_element_type=f32).astype(logits_ref.dtype)


# ----------------------------- JAX glue -------------------------------------
def rope_cos_sin(positions, head_dim, theta):
    inv_freq = 1.0 / (
        theta ** (jnp.arange(0, head_dim, 2, dtype=jnp.float32) / head_dim))
    freqs = positions.astype(jnp.float32)[:, None] * inv_freq[None, :]   # (T, D/2)
    cos = jnp.concatenate([jnp.cos(freqs)] * 2, axis=-1)                 # (T, D)
    sin = jnp.concatenate([jnp.sin(freqs)] * 2, axis=-1)
    return cos, sin


@jax.jit
def forward(packed, input_ids, positions):
    T = input_ids.shape[0]
    # embedding lookup (gather) kept in plain JAX
    hidden0 = packed["embed"][input_ids].astype(jnp.float32)            # (T, H)

    cos, sin = rope_cos_sin(positions, HEAD_DIM, ROPE_THETA)
    cossin = jnp.concatenate(
        [jnp.tile(cos, (1, N_HEADS)), jnp.tile(sin, (1, N_HEADS)),
         jnp.tile(cos, (1, N_KV_HEADS)), jnp.tile(sin, (1, N_KV_HEADS))],
        axis=-1)                                                         # (T, 192)

    kern = functools.partial(
        _fused_forward_kernel, eps=RMS_EPS, n_heads=N_HEADS,
        n_kv_heads=N_KV_HEADS, head_dim=HEAD_DIM,
        q_size=Q_SIZE, kv_size=KV_SIZE, inter=INTERMEDIATE)

    grid_spec = pltpu.PrefetchScalarGridSpec(
        num_scalar_prefetch=0,
        grid=(N_LAYERS,),
        in_specs=[
            pl.BlockSpec((T, HIDDEN), lambda l: (0, 0)),                 # embedded tokens
            pl.BlockSpec((T, COSSIN_PACK), lambda l: (0, 0)),            # cos/sin (once)
            pl.BlockSpec((None, 1, HIDDEN), lambda l: (l, 0, 0)),        # ln1
            pl.BlockSpec((None, 1, HIDDEN), lambda l: (l, 0, 0)),        # ln2
            pl.BlockSpec((None, HIDDEN, QKV_PACK), lambda l: (l, 0, 0)),  # qkv(+rot) pack
            pl.BlockSpec((None, Q_SIZE, HIDDEN), lambda l: (l, 0, 0)),   # o_proj
            pl.BlockSpec((None, HIDDEN, GU_PACK), lambda l: (l, 0, 0)),  # gate|up pack
            pl.BlockSpec((None, INTERMEDIATE, HIDDEN), lambda l: (l, 0, 0)),  # down
            pl.BlockSpec((1, HIDDEN), lambda l: (0, 0)),                 # final norm
            pl.BlockSpec((HIDDEN, VOCAB), lambda l: (0, 0)),             # tied lm_head
        ],
        out_specs=[
            pl.BlockSpec((T, HIDDEN), lambda l: (0, 0)),
            pl.BlockSpec((T, VOCAB), lambda l: (0, 0)),
        ],
        scratch_shapes=[pltpu.VMEM((T, HIDDEN), jnp.float32)],           # residual stream
    )

    hidden, logits = pl.pallas_call(
        kern,
        grid_spec=grid_spec,
        out_shape=(jax.ShapeDtypeStruct((T, HIDDEN), jnp.float32),
                   jax.ShapeDtypeStruct((T, VOCAB), jnp.float32)),
        compiler_params=pltpu.CompilerParams(
            dimension_semantics=("arbitrary",)),       # layer axis is sequential (carry)
    )(hidden0, cossin, packed["ln1"], packed["ln2"],
      packed["wqkv"], packed["wo"], packed["wgu"], packed["wd"],
      packed["final_norm"], packed["lm_head"])
    return hidden, logits


# ----------------------------- params ---------------------------------------
def _rotate_half_matrix(d):
    # (x @ R) == concat(-x[d/2:], x[:d/2])  (neox rotate-half)
    half = d // 2
    idx = jnp.arange(half)
    r = jnp.zeros((d, d), jnp.float32)
    r = r.at[idx + half, idx].set(-1.0)
    r = r.at[idx, idx + half].set(1.0)
    return r


def init_raw_params(key):
    def nrm(k, shape, scale=0.02):
        return jax.random.normal(k, shape, dtype=jnp.float32) * scale

    keys = jax.random.split(key, 2 + N_LAYERS)
    raw = {
        "embed": nrm(keys[0], (VOCAB, HIDDEN)),
        "final_norm": 1.0 + nrm(keys[1], (HIDDEN,), 0.01),
        "layers": [],
    }
    for li in range(N_LAYERS):
        lk = jax.random.split(keys[2 + li], 9)
        raw["layers"].append({
            "ln1": 1.0 + nrm(lk[0], (HIDDEN,), 0.01),
            "ln2": 1.0 + nrm(lk[1], (HIDDEN,), 0.01),
            "w_q": nrm(lk[2], (HIDDEN, Q_SIZE)),
            "w_k": nrm(lk[3], (HIDDEN, KV_SIZE)),
            "w_v": nrm(lk[4], (HIDDEN, KV_SIZE)),
            "w_o": nrm(lk[5], (Q_SIZE, HIDDEN)),
            "w_gate": nrm(lk[6], (HIDDEN, INTERMEDIATE)),
            "w_up": nrm(lk[7], (HIDDEN, INTERMEDIATE)),
            "w_down": nrm(lk[8], (INTERMEDIATE, HIDDEN)),
        })
    return raw


def pack_params(raw):
    """Fold RoPE rotation + softmax scale into weights, pack lane-dense bf16 slabs."""
    rot_q = jnp.kron(jnp.eye(N_HEADS, dtype=jnp.float32), _rotate_half_matrix(HEAD_DIM))
    rot_k = jnp.kron(jnp.eye(N_KV_HEADS, dtype=jnp.float32), _rotate_half_matrix(HEAD_DIM))
    scale = HEAD_DIM ** -0.5

    wqkv, wo, wgu, wd, ln1, ln2 = [], [], [], [], [], []
    pad = jnp.zeros((HIDDEN, KV_SIZE), jnp.float32)
    for lyr in raw["layers"]:
        wq_s = lyr["w_q"] * scale
        wqr_s = (lyr["w_q"] @ rot_q) * scale
        wkr = lyr["w_k"] @ rot_k
        wqkv.append(jnp.concatenate(
            [wq_s, lyr["w_k"], lyr["w_v"], wqr_s, wkr, pad], axis=1))    # (H, 256)
        wo.append(lyr["w_o"])
        wgu.append(jnp.concatenate([lyr["w_gate"], lyr["w_up"]], axis=1))  # (H, 256)
        wd.append(lyr["w_down"])
        ln1.append(lyr["ln1"])
        ln2.append(lyr["ln2"])

    return {
        "embed": raw["embed"],                                           # f32 (gather)
        "lm_head": raw["embed"].T.astype(jnp.bfloat16),                  # tied, transposed
        "final_norm": raw["final_norm"].reshape(1, HIDDEN),              # f32
        "ln1": jnp.stack(ln1).reshape(N_LAYERS, 1, HIDDEN),              # f32
        "ln2": jnp.stack(ln2).reshape(N_LAYERS, 1, HIDDEN),              # f32
        "wqkv": jnp.stack(wqkv).astype(jnp.bfloat16),                    # (L, H, 256)
        "wo": jnp.stack(wo).astype(jnp.bfloat16),                        # (L, 64, 64)
        "wgu": jnp.stack(wgu).astype(jnp.bfloat16),                      # (L, H, 256)
        "wd": jnp.stack(wd).astype(jnp.bfloat16),                        # (L, 128, 64)
    }


# ----------------------------- pure-JAX f32 reference ------------------------
def _rope_ref(x, cos, sin, n_heads):
    T = x.shape[0]
    xh = x.reshape(T, n_heads, HEAD_DIM)
    half = HEAD_DIM // 2
    rot = jnp.concatenate([-xh[..., half:], xh[..., :half]], axis=-1)
    return (xh * cos[:, None, :] + rot * sin[:, None, :]).reshape(T, n_heads * HEAD_DIM)


def reference_forward(raw, input_ids, positions):
    T = input_ids.shape[0]
    cos, sin = rope_cos_sin(positions, HEAD_DIM, ROPE_THETA)
    scale = HEAD_DIM ** -0.5
    rep = N_HEADS // N_KV_HEADS
    causal = jnp.tril(jnp.ones((T, T), bool))

    def rms(v, w):
        return v * lax.rsqrt(jnp.mean(v * v, axis=-1, keepdims=True) + RMS_EPS) * w

    x = raw["embed"][input_ids].astype(jnp.float32)    # residual stream
    for lyr in raw["layers"]:
        n1 = rms(x, lyr["ln1"])
        q = _rope_ref(n1 @ lyr["w_q"], cos, sin, N_HEADS)
        k = _rope_ref(n1 @ lyr["w_k"], cos, sin, N_KV_HEADS)
        v = n1 @ lyr["w_v"]
        outs = []
        for h in range(N_HEADS):
            g = h // rep
            qh = q[:, h * HEAD_DIM:(h + 1) * HEAD_DIM] * scale
            kh = k[:, g * HEAD_DIM:(g + 1) * HEAD_DIM]
            vh = v[:, g * HEAD_DIM:(g + 1) * HEAD_DIM]
            s = jnp.where(causal, qh @ kh.T, -jnp.inf)
            outs.append(jax.nn.softmax(s, axis=-1) @ vh)
        attn = jnp.concatenate(outs, axis=-1) @ lyr["w_o"]
        x2 = x + attn
        n2 = rms(x2, lyr["ln2"])
        g_ = n2 @ lyr["w_gate"]
        u_ = n2 @ lyr["w_up"]
        x = x2 + (g_ * jax.nn.sigmoid(g_) * u_) @ lyr["w_down"]
    hidden = rms(x, raw["final_norm"])
    logits = hidden @ raw["embed"].T
    return hidden, logits


# ----------------------------- driver ----------------------------------------
if __name__ == "__main__":
    root = jax.random.PRNGKey(0)
    pkey, ikey = jax.random.split(root)
    raw = init_raw_params(pkey)
    packed = pack_params(raw)

    input_ids = jax.random.randint(ikey, (SEQ,), 0, VOCAB)
    positions = jnp.arange(SEQ, dtype=jnp.int32)

    hidden_states, logits = forward(packed, input_ids, positions)
    jax.block_until_ready((hidden_states, logits))

    assert hidden_states.shape == (SEQ, HIDDEN)
    assert logits.shape == (SEQ, VOCAB)
    assert bool(jnp.all(jnp.isfinite(hidden_states)))
    assert bool(jnp.all(jnp.isfinite(logits)))

    # Loose-tolerance check vs. pure-JAX f32 reference (bf16 MXU operands + approx
    # reciprocal in softmax -> not bit-exact; structural bugs would show as O(1) diffs).
    ref_hidden, ref_logits = reference_forward(raw, input_ids, positions)
    assert bool(jnp.allclose(hidden_states, ref_hidden, atol=5e-2, rtol=5e-2)), \
        float(jnp.max(jnp.abs(hidden_states - ref_hidden)))
    assert bool(jnp.allclose(logits, ref_logits, atol=5e-2, rtol=5e-2)), \
        float(jnp.max(jnp.abs(logits - ref_logits)))

    print("KERNEL_OK")
</pallas_src>

<mosaic_0001>
module attributes {stable_mosaic.version = 11 : i64} {
  func.func @_fused_forward_kernel(%arg0: i32, %arg1: memref<8x64xf32, #tpu.memory_space<vmem>>, %arg2: memref<8x192xf32, #tpu.memory_space<vmem>>, %arg3: memref<1x1x64xf32, #tpu.memory_space<vmem>>, %arg4: memref<1x1x64xf32, #tpu.memory_space<vmem>>, %arg5: memref<1x64x256xbf16, #tpu.memory_space<vmem>>, %arg6: memref<1x64x64xbf16, #tpu.memory_space<vmem>>, %arg7: memref<1x64x256xbf16, #tpu.memory_space<vmem>>, %arg8: memref<1x128x64xbf16, #tpu.memory_space<vmem>>, %arg9: memref<1x64xf32, #tpu.memory_space<vmem>>, %arg10: memref<64x128xbf16, #tpu.memory_space<vmem>>, %arg11: memref<8x64xf32, #tpu.memory_space<vmem>>, %arg12: memref<8x128xf32, #tpu.memory_space<vmem>>, %arg13: memref<8x64xf32, #tpu.memory_space<vmem>>) attributes {dimension_semantics = [#tpu.dimension_semantics<arbitrary>], iteration_bounds = array<i64: 2>, scalar_prefetch = 0 : i64, scratch_operands = 1 : i64, tpu.core_type = #tpu.core_type<tc>, window_params = [{pipeline_mode = #tpu.pipeline_mode<synchronous>, transform_indices = @transform_0, window_bounds = array<i64: 8, 64>}, {pipeline_mode = #tpu.pipeline_mode<synchronous>, transform_indices = @transform_1, window_bounds = array<i64: 8, 192>}, {transform_indices = @transform_2, window_bounds = array<i64: 1, 1, 64>}, {transform_indices = @transform_3, window_bounds = array<i64: 1, 1, 64>}, {transform_indices = @transform_4, window_bounds = array<i64: 1, 64, 256>}, {transform_indices = @transform_5, window_bounds = array<i64: 1, 64, 64>}, {transform_indices = @transform_6, window_bounds = array<i64: 1, 64, 256>}, {transform_indices = @transform_7, window_bounds = array<i64: 1, 128, 64>}, {pipeline_mode = #tpu.pipeline_mode<synchronous>, transform_indices = @transform_8, window_bounds = array<i64: 1, 64>}, {pipeline_mode = #tpu.pipeline_mode<synchronous>, transform_indices = @transform_9, window_bounds = array<i64: 64, 128>}, {pipeline_mode = #tpu.pipeline_mode<synchronous>, transform_indices = @transform_10, window_bounds = array<i64: 8, 64>}, {pipeline_mode = #tpu.pipeline_mode<synchronous>, transform_indices = @transform_11, window_bounds = array<i64: 8, 128>}]} {
    %c0_i32 = arith.constant 0 : i32
    %0 = arith.cmpi eq, %arg0, %c0_i32 : i32
    %1 = arith.extui %0 : i1 to i32
    %c0_i32_0 = arith.constant 0 : i32
    %2 = arith.cmpi ne, %1, %c0_i32_0 : i32
    scf.if %2 {
      %c0_57 = arith.constant 0 : index
      %c0_58 = arith.constant 0 : index
      %160 = vector.load %arg1[%c0_57, %c0_58] : memref<8x64xf32, #tpu.memory_space<vmem>>, vector<8x64xf32>
      %c0_59 = arith.constant 0 : index
      %c0_60 = arith.constant 0 : index
      %161 = vector.load %arg13[%c0_59, %c0_60] : memref<8x64xf32, #tpu.memory_space<vmem>>, vector<8x64xf32>
      tpu.vector_store %arg13[%c0_59, %c0_60], %160 {strides = array<i32>} : memref<8x64xf32, #tpu.memory_space<vmem>>, vector<8x64xf32>,
    } else {
    }
    %c0 = arith.constant 0 : index
    %c0_1 = arith.constant 0 : index
    %3 = vector.load %arg13[%c0, %c0_1] : memref<8x64xf32, #tpu.memory_space<vmem>>, vector<8x64xf32>
    %4 = arith.mulf %3, %3 : vector<8x64xf32>
    %cst = arith.constant dense<0.000000e+00> : vector<8xf32>
    %5 = vector.multi_reduction <add>, %4, %cst [1] : vector<8x64xf32> to vector<8xf32>
    %6 = vector.shape_cast %5 : vector<8xf32> to vector<8x1xf32>
    %cst_2 = arith.constant 6.400000e+01 : f32
    %7 = vector.broadcast %cst_2 : f32 to vector<8x1xf32>
    %8 = arith.divf %6, %7 : vector<8x1xf32>
    %cst_3 = arith.constant 9.99999997E-7 : f32
    %9 = vector.broadcast %cst_3 : f32 to vector<8x1xf32>
    %10 = arith.addf %8, %9 : vector<8x1xf32>
    %11 = math.rsqrt %10 : vector<8x1xf32>
    %12 = vector.broadcast %11 : vector<8x1xf32> to vector<8x64xf32>
    %13 = arith.mulf %3, %12 : vector<8x64xf32>
    %c0_4 = arith.constant 0 : index
    %c0_5 = arith.constant 0 : index
    %c0_6 = arith.constant 0 : index
    %14 = vector.load %arg3[%c0_4, %c0_5, %c0_6] : memref<1x1x64xf32, #tpu.memory_space<vmem>>, vector<1x1x64xf32>
    %15 = vector.shape_cast %14 : vector<1x1x64xf32> to vector<1x64xf32>
    %16 = vector.broadcast %15 : vector<1x64xf32> to vector<8x64xf32>
    %17 = arith.mulf %13, %16 : vector<8x64xf32>
    %18 = arith.truncf %17 : vector<8x64xf32> to vector<8x64xbf16>
    %c0_7 = arith.constant 0 : index
    %c0_8 = arith.constant 0 : index
    %c0_9 = arith.constant 0 : index
    %19 = vector.load %arg5[%c0_7, %c0_8, %c0_9] : memref<1x64x256xbf16, #tpu.memory_space<vmem>>, vector<1x64x256xbf16>
    %20 = vector.shape_cast %19 : vector<1x64x256xbf16> to vector<64x256xbf16>
    %cst_10 = arith.constant dense<0.000000e+00> : vector<8x256xf32>
    %21 = tpu.matmul %18, %20, %cst_10 {dimension_numbers = #tpu.dot_dimension_numbers<[1], [0], [0], [1], [0, 0, 1, 1], [], []>} : vector<8x64xbf16>, vector<64x256xbf16>, vector<8x256xf32> -> vector<8x256xf32>
    %22 = vector.extract_strided_slice %21 {offsets = [0, 0], sizes = [8, 64], strides = [1, 1]} : vector<8x256xf32> to vector<8x64xf32>
    %23 = vector.extract_strided_slice %21 {offsets = [0, 64], sizes = [8, 32], strides = [1, 1]} : vector<8x256xf32> to vector<8x32xf32>
    %24 = vector.extract_strided_slice %21 {offsets = [0, 96], sizes = [8, 32], strides = [1, 1]} : vector<8x256xf32> to vector<8x32xf32>
    %25 = vector.extract_strided_slice %21 {offsets = [0, 128], sizes = [8, 64], strides = [1, 1]} : vector<8x256xf32> to vector<8x64xf32>
    %26 = vector.extract_strided_slice %21 {offsets = [0, 192], sizes = [8, 32], strides = [1, 1]} : vector<8x256xf32> to vector<8x32xf32>
    %c0_11 = arith.constant 0 : index
    %c0_12 = arith.constant 0 : index
    %27 = vector.load %arg2[%c0_11, %c0_12] : memref<8x192xf32, #tpu.memory_space<vmem>>, vector<8x64xf32>
    %c0_13 = arith.constant 0 : index
    %c64 = arith.constant 64 : index
    %28 = vector.load %arg2[%c0_13, %c64] : memref<8x192xf32, #tpu.memory_space<vmem>>, vector<8x64xf32>
    %c0_14 = arith.constant 0 : index
    %c128 = arith.constant 128 : index
    %29 = vector.load %arg2[%c0_14, %c128] : memref<8x192xf32, #tpu.memory_space<vmem>>, vector<8x32xf32>
    %c0_15 = arith.constant 0 : index
    %c160 = arith.constant 160 : index
    %30 = vector.load %arg2[%c0_15, %c160] : memref<8x192xf32, #tpu.memory_space<vmem>>, vector<8x32xf32>
    %31 = arith.mulf %22, %27 : vector<8x64xf32>
    %32 = arith.mulf %25, %28 : vector<8x64xf32>
    %33 = arith.addf %31, %32 : vector<8x64xf32>
    %34 = arith.mulf %23, %29 : vector<8x32xf32>
    %35 = arith.mulf %26, %30 : vector<8x32xf32>
    %36 = arith.addf %34, %35 : vector<8x32xf32>
    %37 = tpu.iota {dimensions = array<i32: 0>} : vector<16x8xi32>
    %38 = tpu.iota {dimensions = array<i32: 1>} : vector<16x8xi32>
    %c8_i32 = arith.constant 8 : i32
    %c0_i32_16 = arith.constant 0 : i32
    %39 = arith.cmpi eq, %c8_i32, %c0_i32_16 : i32
    %c1_i32 = arith.constant 1 : i32
    %40 = arith.select %39, %c1_i32, %c8_i32 : i32
    %41 = vector.broadcast %40 : i32 to vector<16x8xi32>
    %42 = arith.remsi %37, %41 : vector<16x8xi32>
    %c0_i32_17 = arith.constant 0 : i32
    %43 = vector.broadcast %c0_i32_17 : i32 to vector<16x8xi32>
    %44 = arith.cmpi ne, %42, %43 : vector<16x8xi32>
    %c0_i32_18 = arith.constant 0 : i32
    %45 = vector.broadcast %c0_i32_18 : i32 to vector<16x8xi32>
    %46 = arith.cmpi slt, %42, %45 : vector<16x8xi32>
    %c0_i32_19 = arith.constant 0 : i32
    %47 = arith.cmpi slt, %40, %c0_i32_19 : i32
    %48 = vector.broadcast %47 : i1 to vector<16x8xi1>
    %49 = vector.broadcast %48 : vector<16x8xi1> to vector<16x8xi1>
    %50 = arith.xori %46, %49 : vector<16x8xi1>
    %51 = arith.andi %50, %44 : vector<16x8xi1>
    %52 = vector.broadcast %40 : i32 to vector<16x8xi32>
    %53 = arith.addi %42, %52 : vector<16x8xi32>
    %54 = arith.select %51, %53, %42 : vector<16x8xi1>, vector<16x8xi32>
    %55 = arith.cmpi sle, %38, %54 : vector<16x8xi32>
    %56 = arith.truncf %36 : vector<8x32xf32> to vector<8x32xbf16>
    %57 = arith.truncf %24 : vector<8x32xf32> to vector<8x32xbf16>
    %c0_20 = arith.constant 0 : index
    %c0_21 = arith.constant 0 : index
    %c0_22 = arith.constant 0 : index
    %58 = vector.load %arg6[%c0_20, %c0_21, %c0_22] : memref<1x64x64xbf16, #tpu.memory_space<vmem>>, vector<1x64x64xbf16>
    %59 = vector.shape_cast %58 : vector<1x64x64xbf16> to vector<64x64xbf16>
    %cst_23 = arith.constant 0.000000e+00 : f32
    %60 = vector.broadcast %cst_23 : f32 to vector<8x64xf32>
    %61 = vector.extract_strided_slice %33 {offsets = [0, 0], sizes = [8, 16], strides = [1, 1]} : vector<8x64xf32> to vector<8x16xf32>
    %62 = vector.extract_strided_slice %33 {offsets = [0, 16], sizes = [8, 16], strides = [1, 1]} : vector<8x64xf32> to vector<8x16xf32>
    %63 = tpu.concatenate %61, %62 in 0 : vector<8x16xf32>, vector<8x16xf32> -> vector<16x16xf32>
    %64 = arith.truncf %63 : vector<16x16xf32> to vector<16x16xbf16>
    %65 = vector.extract_strided_slice %56 {offsets = [0, 0], sizes = [8, 16], strides = [1, 1]} : vector<8x32xbf16> to vector<8x16xbf16>
    %66 = vector.extract_strided_slice %57 {offsets = [0, 0], sizes = [8, 16], strides = [1, 1]} : vector<8x32xbf16> to vector<8x16xbf16>
    %cst_24 = arith.constant dense<0.000000e+00> : vector<16x8xf32>
    %67 = tpu.matmul %64, %65, %cst_24 {dimension_numbers = #tpu.dot_dimension_numbers<[1], [1], [0], [0], [0, 0, 1, 0], [], []>} : vector<16x16xbf16>, vector<8x16xbf16>, vector<16x8xf32> -> vector<16x8xf32>
    %cst_25 = arith.constant -1.000000e+30 : f32
    %68 = vector.broadcast %cst_25 : f32 to vector<16x8xf32>
    %69 = arith.select %55, %67, %68 : vector<16x8xi1>, vector<16x8xf32>
    %cst_26 = arith.constant dense<0xFF800000> : vector<16xf32>
    %70 = vector.multi_reduction <maximumf>, %69, %cst_26 [1] : vector<16x8xf32> to vector<16xf32>
    %71 = vector.shape_cast %70 : vector<16xf32> to vector<16x1xf32>
    %72 = vector.broadcast %71 : vector<16x1xf32> to vector<16x8xf32>
    %73 = arith.subf %69, %72 : vector<16x8xf32>
    %74 = math.exp %73 : vector<16x8xf32>
    %cst_27 = arith.constant dense<0.000000e+00> : vector<16xf32>
    %75 = vector.multi_reduction <add>, %74, %cst_27 [1] : vector<16x8xf32> to vector<16xf32>
    %76 = vector.shape_cast %75 : vector<16xf32> to vector<16x1xf32>
    %77 = tpu.reciprocal %76 {approx = true} : vector<16x1xf32> -> vector<16x1xf32>
    %78 = vector.broadcast %77 : vector<16x1xf32> to vector<16x8xf32>
    %79 = arith.mulf %74, %78 : vector<16x8xf32>
    %80 = arith.truncf %79 : vector<16x8xf32> to vector<16x8xbf16>
    %cst_28 = arith.constant dense<0.000000e+00> : vector<16x16xf32>
    %81 = tpu.matmul %80, %66, %cst_28 {dimension_numbers = #tpu.dot_dimension_numbers<[1], [0], [0], [1], [0, 0, 1, 1], [], []>} : vector<16x8xbf16>, vector<8x16xbf16>, vector<16x16xf32> -> vector<16x16xf32>
    %82 = vector.extract_strided_slice %81 {offsets = [0, 0], sizes = [8, 16], strides = [1, 1]} : vector<16x16xf32> to vector<8x16xf32>
    %83 = arith.truncf %82 : vector<8x16xf32> to vector<8x16xbf16>
    %84 = vector.extract_strided_slice %59 {offsets = [0, 0], sizes = [16, 64], strides = [1, 1]} : vector<64x64xbf16> to vector<16x64xbf16>
    %cst_29 = arith.constant dense<0.000000e+00> : vector<8x64xf32>
    %85 = tpu.matmul %83, %84, %cst_29 {dimension_numbers = #tpu.dot_dimension_numbers<[1], [0], [0], [1], [0, 0, 1, 1], [], []>} : vector<8x16xbf16>, vector<16x64xbf16>, vector<8x64xf32> -> vector<8x64xf32>
    %86 = arith.addf %60, %85 : vector<8x64xf32>
    %87 = vector.extract_strided_slice %81 {offsets = [8, 0], sizes = [8, 16], strides = [1, 1]} : vector<16x16xf32> to vector<8x16xf32>
    %88 = arith.truncf %87 : vector<8x16xf32> to vector<8x16xbf16>
    %89 = vector.extract_strided_slice %59 {offsets = [16, 0], sizes = [16, 64], strides = [1, 1]} : vector<64x64xbf16> to vector<16x64xbf16>
    %cst_30 = arith.constant dense<0.000000e+00> : vector<8x64xf32>
    %90 = tpu.matmul %88, %89, %cst_30 {dimension_numbers = #tpu.dot_dimension_numbers<[1], [0], [0], [1], [0, 0, 1, 1], [], []>} : vector<8x16xbf16>, vector<16x64xbf16>, vector<8x64xf32> -> vector<8x64xf32>
    %91 = arith.addf %86, %90 : vector<8x64xf32>
    %92 = vector.extract_strided_slice %33 {offsets = [0, 32], sizes = [8, 16], strides = [1, 1]} : vector<8x64xf32> to vector<8x16xf32>
    %93 = vector.extract_strided_slice %33 {offsets = [0, 48], sizes = [8, 16], strides = [1, 1]} : vector<8x64xf32> to vector<8x16xf32>
    %94 = tpu.concatenate %92, %93 in 0 : vector<8x16xf32>, vector<8x16xf32> -> vector<16x16xf32>
    %95 = arith.truncf %94 : vector<16x16xf32> to vector<16x16xbf16>
    %96 = vector.extract_strided_slice %56 {offsets = [0, 16], sizes = [8, 16], strides = [1, 1]} : vector<8x32xbf16> to vector<8x16xbf16>
    %97 = vector.extract_strided_slice %57 {offsets = [0, 16], sizes = [8, 16], strides = [1, 1]} : vector<8x32xbf16> to vector<8x16xbf16>
    %cst_31 = arith.constant dense<0.000000e+00> : vector<16x8xf32>
    %98 = tpu.matmul %95, %96, %cst_31 {dimension_numbers = #tpu.dot_dimension_numbers<[1], [1], [0], [0], [0, 0, 1, 0], [], []>} : vector<16x16xbf16>, vector<8x16xbf16>, vector<16x8xf32> -> vector<16x8xf32>
    %cst_32 = arith.constant -1.000000e+30 : f32
    %99 = vector.broadcast %cst_32 : f32 to vector<16x8xf32>
    %100 = arith.select %55, %98, %99 : vector<16x8xi1>, vector<16x8xf32>
    %cst_33 = arith.constant dense<0xFF800000> : vector<16xf32>
    %101 = vector.multi_reduction <maximumf>, %100, %cst_33 [1] : vector<16x8xf32> to vector<16xf32>
    %102 = vector.shape_cast %101 : vector<16xf32> to vector<16x1xf32>
    %103 = vector.broadcast %102 : vector<16x1xf32> to vector<16x8xf32>
    %104 = arith.subf %100, %103 : vector<16x8xf32>
    %105 = math.exp %104 : vector<16x8xf32>
    %cst_34 = arith.constant dense<0.000000e+00> : vector<16xf32>
    %106 = vector.multi_reduction <add>, %105, %cst_34 [1] : vector<16x8xf32> to vector<16xf32>
    %107 = vector.shape_cast %106 : vector<16xf32> to vector<16x1xf32>
    %108 = tpu.reciprocal %107 {approx = true} : vector<16x1xf32> -> vector<16x1xf32>
    %109 = vector.broadcast %108 : vector<16x1xf32> to vector<16x8xf32>
    %110 = arith.mulf %105, %109 : vector<16x8xf32>
    %111 = arith.truncf %110 : vector<16x8xf32> to vector<16x8xbf16>
    %cst_35 = arith.constant dense<0.000000e+00> : vector<16x16xf32>
    %112 = tpu.matmul %111, %97, %cst_35 {dimension_numbers = #tpu.dot_dimension_numbers<[1], [0], [0], [1], [0, 0, 1, 1], [], []>} : vector<16x8xbf16>, vector<8x16xbf16>, vector<16x16xf32> -> vector<16x16xf32>
    %113 = vector.extract_strided_slice %112 {offsets = [0, 0], sizes = [8, 16], strides = [1, 1]} : vector<16x16xf32> to vector<8x16xf32>
    %114 = arith.truncf %113 : vector<8x16xf32> to vector<8x16xbf16>
    %115 = vector.extract_strided_slice %59 {offsets = [32, 0], sizes = [16, 64], strides = [1, 1]} : vector<64x64xbf16> to vector<16x64xbf16>
    %cst_36 = arith.constant dense<0.000000e+00> : vector<8x64xf32>
    %116 = tpu.matmul %114, %115, %cst_36 {dimension_numbers = #tpu.dot_dimension_numbers<[1], [0], [0], [1], [0, 0, 1, 1], [], []>} : vector<8x16xbf16>, vector<16x64xbf16>, vector<8x64xf32> -> vector<8x64xf32>
    %117 = arith.addf %91, %116 : vector<8x64xf32>
    %118 = vector.extract_strided_slice %112 {offsets = [8, 0], sizes = [8, 16], strides = [1, 1]} : vector<16x16xf32> to vector<8x16xf32>
    %119 = arith.truncf %118 : vector<8x16xf32> to vector<8x16xbf16>
    %120 = vector.extract_strided_slice %59 {offsets = [48, 0], sizes = [16, 64], strides = [1, 1]} : vector<64x64xbf16> to vector<16x64xbf16>
    %cst_37 = arith.constant dense<0.000000e+00> : vector<8x64xf32>
    %121 = tpu.matmul %119, %120, %cst_37 {dimension_numbers = #tpu.dot_dimension_numbers<[1], [0], [0], [1], [0, 0, 1, 1], [], []>} : vector<8x16xbf16>, vector<16x64xbf16>, vector<8x64xf32> -> vector<8x64xf32>
    %122 = arith.addf %117, %121 : vector<8x64xf32>
    %123 = arith.addf %3, %122 : vector<8x64xf32>
    %124 = arith.mulf %123, %123 : vector<8x64xf32>
    %cst_38 = arith.constant dense<0.000000e+00> : vector<8xf32>
    %125 = vector.multi_reduction <add>, %124, %cst_38 [1] : vector<8x64xf32> to vector<8xf32>
    %126 = vector.shape_cast %125 : vector<8xf32> to vector<8x1xf32>
    %cst_39 = arith.constant 6.400000e+01 : f32
    %127 = vector.broadcast %cst_39 : f32 to vector<8x1xf32>
    %128 = arith.divf %126, %127 : vector<8x1xf32>
    %cst_40 = arith.constant 9.99999997E-7 : f32
    %129 = vector.broadcast %cst_40 : f32 to vector<8x1xf32>
    %130 = arith.addf %128, %129 : vector<8x1xf32>
    %131 = math.rsqrt %130 : vector<8x1xf32>
    %132 = vector.broadcast %131 : vector<8x1xf32> to vector<8x64xf32>
    %133 = arith.mulf %123, %132 : vector<8x64xf32>
    %c0_41 = arith.constant 0 : index
    %c0_42 = arith.constant 0 : index
    %c0_43 = arith.constant 0 : index
    %134 = vector.load %arg4[%c0_41, %c0_42, %c0_43] : memref<1x1x64xf32, #tpu.memory_space<vmem>>, vector<1x1x64xf32>
    %135 = vector.shape_cast %134 : vector<1x1x64xf32> to vector<1x64xf32>
    %136 = vector.broadcast %135 : vector<1x64xf32> to vector<8x64xf32>
    %137 = arith.mulf %133, %136 : vector<8x64xf32>
    %138 = arith.truncf %137 : vector<8x64xf32> to vector<8x64xbf16>
    %c0_44 = arith.constant 0 : index
    %c0_45 = arith.constant 0 : index
    %c0_46 = arith.constant 0 : index
    %139 = vector.load %arg7[%c0_44, %c0_45, %c0_46] : memref<1x64x256xbf16, #tpu.memory_space<vmem>>, vector<1x64x256xbf16>
    %140 = vector.shape_cast %139 : vector<1x64x256xbf16> to vector<64x256xbf16>
    %cst_47 = arith.constant dense<0.000000e+00> : vector<8x256xf32>
    %141 = tpu.matmul %138, %140, %cst_47 {dimension_numbers = #tpu.dot_dimension_numbers<[1], [0], [0], [1], [0, 0, 1, 1], [], []>} : vector<8x64xbf16>, vector<64x256xbf16>, vector<8x256xf32> -> vector<8x256xf32>
    %142 = vector.extract_strided_slice %141 {offsets = [0, 0], sizes = [8, 128], strides = [1, 1]} : vector<8x256xf32> to vector<8x128xf32>
    %143 = vector.extract_strided_slice %141 {offsets = [0, 128], sizes = [8, 128], strides = [1, 1]} : vector<8x256xf32> to vector<8x128xf32>
    %144 = arith.negf %142 : vector<8x128xf32>
    %145 = math.exp %144 : vector<8x128xf32>
    %cst_48 = arith.constant 1.000000e+00 : f32
    %146 = vector.broadcast %cst_48 : f32 to vector<8x128xf32>
    %147 = arith.addf %146, %145 : vector<8x128xf32>
    %148 = arith.divf %146, %147 : vector<8x128xf32>
    %149 = arith.mulf %142, %148 : vector<8x128xf32>
    %150 = arith.mulf %149, %143 : vector<8x128xf32>
    %151 = arith.truncf %150 : vector<8x128xf32> to vector<8x128xbf16>
    %c0_49 = arith.constant 0 : index
    %c0_50 = arith.constant 0 : index
    %c0_51 = arith.constant 0 : index
    %152 = vector.load %arg8[%c0_49, %c0_50, %c0_51] : memref<1x128x64xbf16, #tpu.memory_space<vmem>>, vector<1x128x64xbf16>
    %153 = vector.shape_cast %152 : vector<1x128x64xbf16> to vector<128x64xbf16>
    %cst_52 = arith.constant dense<0.000000e+00> : vector<8x64xf32>
    %154 = tpu.matmul %151, %153, %cst_52 {dimension_numbers = #tpu.dot_dimension_numbers<[1], [0], [0], [1], [0, 0, 1, 1], [], []>} : vector<8x128xbf16>, vector<128x64xbf16>, vector<8x64xf32> -> vector<8x64xf32>
    %155 = arith.addf %123, %154 : vector<8x64xf32>
    %c0_53 = arith.constant 0 : index
    %c0_54 = arith.constant 0 : index
    %156 = vector.load %arg13[%c0_53, %c0_54] : memref<8x64xf32, #tpu.memory_space<vmem>>, vector<8x64xf32>
    tpu.vector_store %arg13[%c0_53, %c0_54], %155 {strides = array<i32>} : memref<8x64xf32, #tpu.memory_space<vmem>>, vector<8x64xf32>,
    %c1_i32_55 = arith.constant 1 : i32
    %157 = arith.cmpi eq, %arg0, %c1_i32_55 : i32
    %158 = arith.extui %157 : i1 to i32
    %c0_i32_56 = arith.constant 0 : i32
    %159 = arith.cmpi ne, %158, %c0_i32_56 : i32
    scf.if %159 {
      %160 = arith.mulf %155, %155 : vector<8x64xf32>
      %cst_57 = arith.constant dense<0.000000e+00> : vector<8xf32>
      %161 = vector.multi_reduction <add>, %160, %cst_57 [1] : vector<8x64xf32> to vector<8xf32>
      %162 = vector.shape_cast %161 : vector<8xf32> to vector<8x1xf32>
      %cst_58 = arith.constant 6.400000e+01 : f32
      %163 = vector.broadcast %cst_58 : f32 to vector<8x1xf32>
      %164 = arith.divf %162, %163 : vector<8x1xf32>
      %cst_59 = arith.constant 9.99999997E-7 : f32
      %165 = vector.broadcast %cst_59 : f32 to vector<8x1xf32>
      %166 = arith.addf %164, %165 : vector<8x1xf32>
      %167 = math.rsqrt %166 : vector<8x1xf32>
      %168 = vector.broadcast %167 : vector<8x1xf32> to vector<8x64xf32>
      %169 = arith.mulf %155, %168 : vector<8x64xf32>
      %c0_60 = arith.constant 0 : index
      %c0_61 = arith.constant 0 : index
      %170 = vector.load %arg9[%c0_60, %c0_61] : memref<1x64xf32, #tpu.memory_space<vmem>>, vector<1x64xf32>
      %171 = vector.broadcast %170 : vector<1x64xf32> to vector<8x64xf32>
      %172 = arith.mulf %169, %171 : vector<8x64xf32>
      %c0_62 = arith.constant 0 : index
      %c0_63 = arith.constant 0 : index
      %173 = vector.load %arg11[%c0_62, %c0_63] : memref<8x64xf32, #tpu.memory_space<vmem>>, vector<8x64xf32>
      tpu.vector_store %arg11[%c0_62, %c0_63], %172 {strides = array<i32>} : memref<8x64xf32, #tpu.memory_space<vmem>>, vector<8x64xf32>,
      %174 = arith.truncf %172 : vector<8x64xf32> to vector<8x64xbf16>
      %c0_64 = arith.constant 0 : index
      %c0_65 = arith.constant 0 : index
      %175 = vector.load %arg10[%c0_64, %c0_65] : memref<64x128xbf16, #tpu.memory_space<vmem>>, vector<64x128xbf16>
      %cst_66 = arith.constant dense<0.000000e+00> : vector<8x128xf32>
      %176 = tpu.matmul %174, %175, %cst_66 {dimension_numbers = #tpu.dot_dimension_numbers<[1], [0], [0], [1], [0, 0, 1, 1], [], []>} : vector<8x64xbf16>, vector<64x128xbf16>, vector<8x128xf32> -> vector<8x128xf32>
      %c0_67 = arith.constant 0 : index
      %c0_68 = arith.constant 0 : index
      %177 = vector.load %arg12[%c0_67, %c0_68] : memref<8x128xf32, #tpu.memory_space<vmem>>, vector<8x128xf32>
      tpu.vector_store %arg12[%c0_67, %c0_68], %176 {strides = array<i32>} : memref<8x128xf32, #tpu.memory_space<vmem>>, vector<8x128xf32>,
    } else {
    }
    return
  }
  func.func @transform_0(%arg0: i32) -> (i32, i32) {
    %c0_i32 = arith.constant 0 : i32
    %c0_i32_0 = arith.constant 0 : i32
    %c0_i32_1 = arith.constant 0 : i32
    return %c0_i32, %c0_i32_0 : i32, i32
  }
  func.func @transform_1(%arg0: i32) -> (i32, i32) {
    %c0_i32 = arith.constant 0 : i32
    %c0_i32_0 = arith.constant 0 : i32
    %c0_i32_1 = arith.constant 0 : i32
    return %c0_i32, %c0_i32_0 : i32, i32
  }
  func.func @transform_2(%arg0: i32) -> (i32, i32, i32) {
    %c0_i32 = arith.constant 0 : i32
    %c0_i32_0 = arith.constant 0 : i32
    %c0_i32_1 = arith.constant 0 : i32
    return %arg0, %c0_i32, %c0_i32_0 : i32, i32, i32
  }
  func.func @transform_3(%arg0: i32) -> (i32, i32, i32) {
    %c0_i32 = arith.constant 0 : i32
    %c0_i32_0 = arith.constant 0 : i32
    %c0_i32_1 = arith.constant 0 : i32
    return %arg0, %c0_i32, %c0_i32_0 : i32, i32, i32
  }
  func.func @transform_4(%arg0: i32) -> (i32, i32, i32) {
    %c0_i32 = arith.constant 0 : i32
    %c0_i32_0 = arith.constant 0 : i32
    %c0_i32_1 = arith.constant 0 : i32
    return %arg0, %c0_i32, %c0_i32_0 : i32, i32, i32
  }
  func.func @transform_5(%arg0: i32) -> (i32, i32, i32) {
    %c0_i32 = arith.constant 0 : i32
    %c0_i32_0 = arith.constant 0 : i32
    %c0_i32_1 = arith.constant 0 : i32
    return %arg0, %c0_i32, %c0_i32_0 : i32, i32, i32
  }
  func.func @transform_6(%arg0: i32) -> (i32, i32, i32) {
    %c0_i32 = arith.constant 0 : i32
    %c0_i32_0 = arith.constant 0 : i32
    %c0_i32_1 = arith.constant 0 : i32
    return %arg0, %c0_i32, %c0_i32_0 : i32, i32, i32
  }
  func.func @transform_7(%arg0: i32) -> (i32, i32, i32) {
    %c0_i32 = arith.constant 0 : i32
    %c0_i32_0 = arith.constant 0 : i32
    %c0_i32_1 = arith.constant 0 : i32
    return %arg0, %c0_i32, %c0_i32_0 : i32, i32, i32
  }
  func.func @transform_8(%arg0: i32) -> (i32, i32) {
    %c0_i32 = arith.constant 0 : i32
    %c0_i32_0 = arith.constant 0 : i32
    %c0_i32_1 = arith.constant 0 : i32
    return %c0_i32, %c0_i32_0 : i32, i32
  }
  func.func @transform_9(%arg0: i32) -> (i32, i32) {
    %c0_i32 = arith.constant 0 : i32
    %c0_i32_0 = arith.constant 0 : i32
    %c0_i32_1 = arith.constant 0 : i32
    return %c0_i32, %c0_i32_0 : i32, i32
  }
  func.func @transform_10(%arg0: i32) -> (i32, i32) {
    %c0_i32 = arith.constant 0 : i32
    %c0_i32_0 = arith.constant 0 : i32
    %c0_i32_1 = arith.constant 0 : i32
    return %c0_i32, %c0_i32_0 : i32, i32
  }
  func.func @transform_11(%arg0: i32) -> (i32, i32) {
    %c0_i32 = arith.constant 0 : i32
    %c0_i32_0 = arith.constant 0 : i32
    %c0_i32_1 = arith.constant 0 : i32
    return %c0_i32, %c0_i32_0 : i32, i32
  }
}

</mosaic_0001>

<bundles_post_ra>
// kernel: tile.34
= control target key start
LH: loop header
LB: loop body
LE: loop exit
PB: predicated region body
PF: predicated region fallthrough
CT: control target
= control target key end

     0   :  { %vm42_vm0 = vcmask 1047556   ;;  %vm44_vm1 = vcmask 130048   ;;  %vm54_vm2 = vcmask 261248   ;;  %s111_s0 = inlined_call_operand.vmem [shape: f32[8,2,16], index: 0, kind: input, shape index: {}]   ;;  %s112_s1 = inlined_call_operand.vmem [shape: f32[8,32], index: 1, kind: output, shape index: {}]  }
   0x1   :  { %v62_v0 = vld [vmem:[%s111_s0 + $0xe] sm:$0x3]  ;;  %v63_v1 = vld [vmem:[%s111_s0 + $0xc] sm:$0x3]  ;;  %v64_v2 = vld [vmem:[%s111_s0 + $0xa] sm:$0x3] }
   0x2   :  { %8 = vst [vmem:[#allocation0 + $0x38] sm:$0x3] %v62_v0  ;;  %13 = vst [vmem:[#allocation0 + $0x30] sm:$0x3] %v63_v1  ;;  %v65_v3 = vld [vmem:[%s111_s0 + $0x8] sm:$0x3] }
   0x3   :  { %18 = vst [vmem:[#allocation0 + $0x28] sm:$0x3] %v64_v2  ;;  %v66_v4 = vld [vmem:[%s111_s0 + $0x6] sm:$0x3]  ;;  %v67_v5 = vld [vmem:[%s111_s0 + $0x4] sm:$0x3] }
   0x4   :  { %23 = vst [vmem:[#allocation0 + $0x20] sm:$0x3] %v65_v3  ;;  %28 = vst [vmem:[#allocation0 + $0x18] sm:$0x3] %v66_v4  ;;  %v68_v6 = vld [vmem:[%s111_s0 + $0x2] sm:$0x3] }
   0x5   :  { %33 = vst [vmem:[#allocation0 + $0x10] sm:$0x3] %v67_v5  ;;  %v38_v7 = vld [vmem:[%s111_s0] sm:$0x3]  ;;  %37 = vst [vmem:[#allocation0 + $0x8] sm:$0x3] %v68_v6 }
   0x6   :  { %39 = vst [vmem:[#allocation0] sm:$0x3] %v38_v7  ;;  %s70_s0 = smov 16  }
   0xb   :  { %v41_v8 = vld [vmem:[#allocation0] ss:$8 sm:$0xf0]   ;;  %v49_v9 = vld [vmem:[#allocation0 + $0x1] ss:$8 sm:$0xf0]  }
   0xd   :  { %v40_v10 = vld [vmem:[#allocation0] ss:$8 sm:$0xf]   ;;  %v47_v11 = vld [vmem:[#allocation0 + $0x1] ss:$8 sm:$0xf]  }
   0xe   :  { %v43_v12 = vsel %vm42_vm0, %v41_v8, %v40_v10  ;;  %v51_v13 = vsel %vm42_vm0, %v49_v9, %v47_v11 }
   0xf   :  { %52 = vrot.lane.b32.xlu0 %v51_v13, %s70_s0  ;;  %45 = vst.msk [vmem:[%s112_s1] sm:$0xff] %vm44_vm1, %v43_v12  }
  0x81   :  { %v53_v14 = vpop.permute.xlu0 %52  }
  0x82   :  { %55 = vst.msk [vmem:[%s112_s1] sm:$0xff] %vm54_vm2, %v53_v14  }

// kernel: tile.29
= control target key start
LH: loop header
LB: loop body
LE: loop exit
PB: predicated region body
PF: predicated region fallthrough
CT: control target
= control target key end

     0   :  { %vm42_vm0 = vcmask 1047556   ;;  %vm44_vm1 = vcmask 130048   ;;  %s93_s22 = smov 16   ;;  %s94_s25 = smov 32   ;;  %vm54_vm2 = vcmask 523648   ;;  %vm64_vm3 = vcmask 392448   ;;  %s146_s0 = inlined_call_operand.vmem [shape: f32[8,4,16], index: 0, kind: input, shape index: {}]   ;;  %s147_s1 = inlined_call_operand.vmem [shape: f32[8,64], index: 1, kind: output, shape index: {}]  }
   0x1   :  { %v82_v0 = vld [vmem:[%s146_s0 + $0x1c] sm:$0xf]  ;;  %v83_v1 = vld [vmem:[%s146_s0 + $0x18] sm:$0xf]  ;;  %v84_v2 = vld [vmem:[%s146_s0 + $0x14] sm:$0xf] }
   0x2   :  { %8 = vst [vmem:[#allocation0 + $0x38] sm:$0xf] %v82_v0  ;;  %13 = vst [vmem:[#allocation0 + $0x30] sm:$0xf] %v83_v1  ;;  %v85_v3 = vld [vmem:[%s146_s0 + $0x10] sm:$0xf] }
   0x3   :  { %18 = vst [vmem:[#allocation0 + $0x28] sm:$0xf] %v84_v2  ;;  %v86_v4 = vld [vmem:[%s146_s0 + $0xc] sm:$0xf]  ;;  %v87_v5 = vld [vmem:[%s146_s0 + $0x8] sm:$0xf] }
   0x4   :  { %23 = vst [vmem:[#allocation0 + $0x20] sm:$0xf] %v85_v3  ;;  %28 = vst [vmem:[#allocation0 + $0x18] sm:$0xf] %v86_v4  ;;  %v88_v6 = vld [vmem:[%s146_s0 + $0x4] sm:$0xf] }
   0x5   :  { %33 = vst [vmem:[#allocation0 + $0x10] sm:$0xf] %v87_v5  ;;  %v38_v7 = vld [vmem:[%s146_s0] sm:$0xf]  ;;  %37 = vst [vmem:[#allocation0 + $0x8] sm:$0xf] %v88_v6 }
   0x6   :  { %39 = vst [vmem:[#allocation0] sm:$0xf] %v38_v7  ;;  %s92_s0 = smov 48   ;;  %vm74_vm4 = vcmask 261248  }
   0xb   :  { %v49_v8 = vld [vmem:[#allocation0 + $0x3] ss:$8 sm:$0xf0]   ;;  %v59_v9 = vld [vmem:[#allocation0 + $0x2] ss:$8 sm:$0xf0]  }
   0xc   :  { %v69_v14 = vld [vmem:[#allocation0 + $0x1] ss:$8 sm:$0xf0]   ;;  %v41_v17 = vld [vmem:[#allocation0] ss:$8 sm:$0xf0]  }
   0xd   :  { %v47_v10 = vld [vmem:[#allocation0 + $0x3] ss:$8 sm:$0xf]   ;;  %v57_v11 = vld [vmem:[#allocation0 + $0x2] ss:$8 sm:$0xf]  }
   0xe   :  { %v51_v12 = vsel %vm42_vm0, %v49_v8, %v47_v10  ;;  %v67_v13 = vld [vmem:[#allocation0 + $0x1] ss:$8 sm:$0xf]   ;;  %v40_v16 = vld [vmem:[#allocation0] ss:$8 sm:$0xf]   ;;  %v61_v18 = vsel %vm42_vm0, %v59_v9, %v57_v11 }
   0xf   :  { %52 = vrot.lane.b32.xlu0 %v51_v12, %s92_s0  ;;  %v71_v15 = vsel %vm42_vm0, %v69_v14, %v67_v13  ;;  %v43_v19 = vsel %vm42_vm0, %v41_v17, %v40_v16 }
  0x10   :  { %72 = vrot.lane.b32.xlu1 %v71_v15, %s93_s22  ;;  %45 = vst.msk [vmem:[%s147_s1] sm:$0xff] %vm44_vm1, %v43_v19  }
  0x13   :  { %62 = vrot.lane.b32.xlu0 %v61_v18, %s94_s25 }
  0x81   :  { %v53_v20 = vpop.permute.xlu0 %52  }
  0x82   :  { %55 = vst.msk [vmem:[%s147_s1] sm:$0xff] %vm54_vm2, %v53_v20   ;;  %v73_v21 = vpop.permute.xlu1 %72  }
  0x85   :  { %v63_v22 = vpop.permute.xlu0 %62  }
  0x86   :  { %65 = vst.msk [vmem:[%s147_s1] sm:$0xff] %vm64_vm3, %v63_v22  }
  0x87   :  { %75 = vst.msk [vmem:[%s147_s1] sm:$0xff] %vm74_vm4, %v73_v21  }

// kernel: forward.1
= control target key start
LH: loop header
LB: loop body
LE: loop exit
PB: predicated region body
PF: predicated region fallthrough
CT: control target
= control target key end

     0   :  { %17 = vsyncpa [#allocation4], 0  ;;  %s2214_s0 = inlined_call_operand.vmem [shape: f32[8,64], index: 0, kind: input, shape index: {}]   ;;  %s2215_s1 = inlined_call_operand.vmem [shape: f32[8,192], index: 1, kind: input, shape index: {}]   ;;  %s2216_s2 = inlined_call_operand.vmem [shape: f32[2,1,64], index: 2, kind: input, shape index: {}]   ;;  %s2217_s3 = inlined_call_operand.vmem [shape: f32[2,1,64], index: 3, kind: input, shape index: {}]   ;;  %s2218_s4 = inlined_call_operand.vmem [shape: bf16[2,64,256], index: 4, kind: input, shape index: {}]   ;;  %s2219_s5 = inlined_call_operand.vmem [shape: bf16[2,64,64], index: 5, kind: input, shape index: {}]   ;;  %s2220_s6 = inlined_call_operand.vmem [shape: bf16[2,64,256], index: 6, kind: input, shape index: {}]   ;;  %s2221_s7 = inlined_call_operand.vmem [shape: bf16[2,128,64], index: 7, kind: input, shape index: {}]   ;;  %s2222_s8 = inlined_call_operand.vmem [shape: f32[1,64], index: 8, kind: input, shape index: {}]   ;;  %s2223_s9 = inlined_call_operand.vmem [shape: bf16[64,128], index: 9, kind: input, shape index: {}]   ;;  %s2224_s10 = inlined_call_operand.hbm [shape: f32[8,64], index: 10, kind: output, shape index: {0}]   ;;  %s2225_s11 = inlined_call_operand.hbm [shape: f32[8,128], index: 11, kind: output, shape index: {1}]  }
   0x1   :  { %18 = vsyncpa [#allocation6], 0  ;;  %s1967_s17 = smov 0  }
   0x2 LB: > { %s1973_s18 = sadd.s32 4294967295, %s1892_s17   ;;  %p1549_p0 = scmp.ge.s32.totalorder %s1892_s17, 1  ;;  %s1892_s17 = sphi %s1967_s17, %s24_s17  }
   0x3   : > { %p378_p1 = scmp.lt.s32.totalorder %s1892_s17, 3 }
   0x5   : > { %p379_p2 = pnand %p1549_p0, %p378_p1 }
   0x6   : > { %p434_p3 = scmp.lt.s32.totalorder (!%p379_p2), %s1973_s18, 1  ;;  %p1558_p4 = scmp.ne.s32.totalorder (!%p379_p2), %s1973_s18, 0 }
   0x7   : > { %382 = sbr.rel (%p379_p2) target bundleno = 3307 (0xceb), region = 60 }
   0xe   : > { %s1979_s19 = scalar_select %p434_p3, %s1973_s18, 1 }
   0xf   : > { %464 = sbr.rel (%p1558_p4) target bundleno = 22 (0x16), region = 64  ;;  %v465_v0 = vld [vmem:[%s2214_s0] sm:$0xff] (!%p1558_p4)  ;;  %vm466_vm0 = vcmask (!%p1558_p4), 523264  }
  0x10   : > { %s439_s25 = scalar_lea.vmem %s2217_s3, %s1979_s19  ;;  %s1613_s26 = sshll.u32 %s1979_s19, 6  ;;  %467 = vst.msk [vmem:[#allocation2] sm:$0xff] (!%p1558_p4), %vm466_vm0, %v465_v0 }
  0x11   : > { %s1614_s27 = sshll.u32 %s1979_s19, 5  ;;  %s444_s30 = scalar_lea.vmem %s2218_s4, %s1613_s26 }
  0x12   : > { %s1997_s14 = scalar_lea.vmem %s2219_s5, %s1614_s27  ;;  %s2002_s20 = scalar_lea.vmem %s2220_s6, %s1613_s26 }
  0x13   : > { %s2007_s23 = scalar_lea.vmem %s2221_s7, %s1613_s26 }
  0x16 PF: > { %vm470_vm1 = vcmask 523264   ;;  %v1760_v4 = vld [vmem:[%s444_s30 + $0x4] ss:$8 sps:$4 sm:$0xff]   ;;  %v1762_v5 = vld [vmem:[%s444_s30] ss:$8 sps:$4 sm:$0xff]   ;;  %v1894_v9 = vmov 0   ;;  %s2226_s16 = scalar_lea.vmem %s2216_s2, %s1979_s19  ;;  %v599_v42 = vlaneseq }
  0x17   : > { %v2013_v1 = vld [vmem:[#allocation2] sm:$0xff]  ;;  %v1763_v6 = vld [vmem:[%s444_s30 + $0x14] ss:$8 sps:$4 sm:$0xff]   ;;  %539 = vmatprep.subr.bf16.mxu0 %v1760_v4  ;;  %v1765_v7 = vld [vmem:[%s444_s30 + $0x10] ss:$8 sps:$4 sm:$0xff]   ;;  %571 = vmatprep.mubr.bf16.mxu0 %v1894_v9  ;;  %s1895_s27 = smov 32  }
  0x18   : > { %v469_v2 = vmul.f32 %v2013_v1, %v2013_v1  ;;  %540 = vmatpush1.bf16.msra.mxu0 %v1762_v5  ;;  %v1766_v8 = vld [vmem:[%s444_s30 + $0x24] ss:$8 sps:$4 sm:$0xff]   ;;  %v1768_v10 = vld [vmem:[%s444_s30 + $0x20] ss:$8 sps:$4 sm:$0xff]   ;;  %v1769_v11 = vld [vmem:[%s444_s30 + $0x34] ss:$8 sps:$4 sm:$0xff]  }
  0x19   : > { %541 = vmatprep.subr.bf16.mxu0 %v1763_v6  ;;  %v1771_v12 = vld [vmem:[%s444_s30 + $0x30] ss:$8 sps:$4 sm:$0xff]   ;;  %v581_v13 = vld [vmem:[%s2215_s1 + $0x8] sm:$0xff]  ;;  %s1896_s29 = smov 64   ;;  %v580_v14 = vld [vmem:[%s2215_s1] sm:$0xff]  ;;  %v1897_v24 = vmov 0.0  }
  0x1a   : > { %v471_v3 = vsel %vm470_vm1, %v469_v2, 0.0  ;;  %594 = vrot.lane.b32.xlu1 %v581_v13, %s1895_s27  ;;  %v1559_v19 = vld [vmem:[%s2226_s16] ss:$0 sm:$0xff]  ;;  %1653 = vmatprep.subr.bf16.mxu1 %v1897_v24  ;;  %vm1898_vm2 = vmmov 0   ;;  %s1899_s21 = smov 112   ;;  %vm648_vm3 = vcmask 130048  }
  0x1b   : > { %472 = vadd.xlane.f32.xlu0 %v471_v3  ;;  %1655 = vmatprep.mubr.msk.bf16.mxu1 %vm1898_vm2, %v1897_v24  ;;  %v600_v43 = vshrl.u32 %v599_v42, 7  ;;  %v603_v45 = vand.u32 127, %v599_v42  ;;  %vm698_vm5 = vcmask 64512   ;;  %vm728_vm7 = vcmask 1043456   ;;  %s1900_s24 = smov 48   ;;  %s1901_s28 = smov 96  }
  0x1c   : > { %542 = vmatpush1.bf16.msra.mxu0 %v1765_v7  ;;  %s1902_s22 = smov 16   ;;  %p1600_p5 = scmp.ne.s32.totalorder %s1973_s18, 1 }
  0x1d   : > { %543 = vmatprep.subr.bf16.mxu0 %v1766_v8  ;;  %v601_v44 = vadd.s32 8, %v600_v43  ;;  %v608_v46 = vand.u32 7, %v600_v43  ;;  %v1772_v8 = vld [vmem:[%s1997_s14 + $0x8] sm:$0xff]   ;;  %vm1904_vm8 = vmmov (!%p1600_p5), 0  }
  0x1e   : > { %584 = vrot.lane.b32.xlu1 %v580_v14, %s1896_s29 }
  0x1f   : > { %v615_v47 = vand.u32 7, %v601_v44  ;;  %vm2047_vm4 = vcmp.le.s32.totalorder %v603_v45, %v608_v46 }
  0x20   : > { %544 = vmatpush1.bf16.msra.mxu0 %v1768_v10 }
  0x21   : > { %545 = vmatprep.subr.bf16.mxu0 %v1769_v11  ;;  %vm2051_vm6 = vcmp.le.s32.totalorder %v603_v45, %v615_v47 }
  0x24   : > { %546 = vmatpush1.bf16.msra.mxu0 %v1771_v12 }
  0x25   : > { %1647 = vmatprep.subr.bf16.mxu0 %v1897_v24 }
  0x31   : > { %590 = vrot.lane.b32.xlu0 %v581_v13, %s1896_s29 }
  0x8c   : > { %v595_v23 = vpop.permute.xlu1 %594 }
  0x90   : > { %v585_v26 = vpop.permute.xlu1 %584 }
  0xa8   : > { %v473_v15 = vpop.xlane.xlu0 %472 }
  0xa9   : > { %v475_v16 = vmul.f32 0.015625, %v473_v15 }
  0xab   : > { %v476_v17 = vadd.f32 1e-06, %v475_v16 }
  0xac   : > { %v591_v25 = vpop.permute.xlu0 %590 }
  0xad   : > { %1796 = vrsqrt.f32 %v476_v17  ;;  %v1773_v17 = vld [vmem:[%s1997_s14] sm:$0xff]  }
  0xb7   : > { %v1797_v18 = vpop.eup %1796 }
  0xb8   : > { %v478_v20 = vmul.f32 %v1797_v18, %v2013_v1 }
  0xba   : > { %v486_v21 = vmul.f32 %v1559_v19, %v478_v20 }
  0xbc   : > { %v487_v22 = vpack.c.bf16 %v486_v21, %v486_v21 }
  0xbe   : > { %1568 = vmatmul.mubr.msk.bf16.vlgmr.msra.gmra.mrb[0].mxu0 %vm470_vm1, %v487_v22 }
  0xbf   : > { %1649 = vmatprep.mubr.msk.bf16.mxu0 %vm1898_vm2, %v1897_v24 }
 0x191   : > { %v573_v27 = vpop.f32.mrb[0].mxu0 }
 0x192   : > { %v582_v28 = vmul.f32 %v580_v14, %v573_v27  ;;  %v593_v29 = vmul.f32 %v591_v25, %v573_v27  ;;  %v575_v30 = vpop.f32.mrb[1].mxu0  ;;  %v2061_v58 = vpack.c.bf16 %v573_v27, %v573_v27 }
 0x193   : > { %v587_v31 = vmul.f32 %v585_v26, %v575_v30  ;;  %v597_v32 = vmul.f32 %v595_v23, %v575_v30  ;;  %v577_v33 = vpop.f32.mrb[2].mxu0 }
 0x194   : > { %v578_v34 = vpop.f32.mrb[3].mxu0 }
 0x195   : > { %v588_v35 = vadd.f32 %v587_v31, %v582_v28  ;;  %v598_v36 = vadd.f32 %v597_v32, %v593_v29 }
 0x197   : > { %v630_v37 = vpack.c.bf16 %v598_v36, %v598_v36 }
 0x199   : > { %646 = vrot.lane.b32.xlu1 %v630_v37, %s1896_s29 }
 0x19d   : > { %641 = vrot.lane.b32.xlu1 %v588_v35, %s1899_s21 }
 0x20b   : > { %v647_v38 = vpop.permute.xlu1 %646 }
 0x20c   : > { %v653_v39 = vsel %vm648_vm3, %v647_v38, 0 }
 0x20d   : > { %1648 = vmatpush3.bf16.xpose.msra.mxu0 %v653_v39 }
 0x20e   : > { %1659 = vmatprep.subr.bf16.mxu0 %v1897_v24 }
 0x20f   : > { %v642_v40 = vpop.permute.xlu1 %641 }
 0x210   : > { %v644_v41 = vpack.c.bf16 %v642_v40, %v588_v35 }
 0x214   : > { %1650 = vmatmul.mubr.msk.bf16.vlgmr.msra.gmra.mrb[4].mxu0 %vm648_vm3, %v644_v41 }
 0x215   : > { %1661 = vmatprep.mubr.msk.bf16.mxu0 %vm1898_vm2, %v1897_v24  ;;  %1660 = vmatpush3.bf16.msra.mxu0 %v1772_v8 }
 0x216   : > { %1671 = vmatprep.subr.bf16.mxu0 %v1897_v24 }
 0x2e7   : > { %v689_v49 = vpop.f32.mrb[4].mxu0 }
 0x2e8   : > { %v696_v51 = vsel %vm2047_vm4, %v689_v49, -1e+30  ;;  %v1651_v52 = vpop.f32.mrb[5].mxu0 }
 0x2e9   : > { %v692_v53 = vpop.f32.mrb[6].mxu0  ;;  %v699_v54 = vsel %vm698_vm5, %v696_v51, -inf }
 0x2ea   : > { %v697_v55 = vsel %vm2051_vm6, %v692_v53, -1e+30  ;;  %700 = vmax.xlane.f32.xlu1 %v699_v54  ;;  %v1652_v56 = vpop.f32.mrb[7].mxu0 }
 0x2eb   : > { %v702_v57 = vsel %vm698_vm5, %v697_v55, -inf }
 0x2ec   : > { %703 = vmax.xlane.f32.xlu0 %v702_v57  ;;  %v1774_v57 = vld [vmem:[%s1997_s14 + $0x10] sm:$0xff]  }
 0x302   : > { %723 = vrot.lane.b32.xlu0 %v2061_v58, %s1895_s27 }
 0x377   : > { %v701_v59 = vpop.xlane.xlu1 %700 }
 0x378   : > { %v705_v60 = vsub.f32 %v696_v51, %v701_v59 }
 0x379   : > { %v704_v61 = vpop.xlane.xlu0 %703 }
 0x37a   : > { %v707_v62 = vmul.f32 1.442695, %v705_v60  ;;  %v706_v63 = vsub.f32 %v697_v55, %v704_v61 }
 0x37c   : > { %1798 = vpow2.f32 %v707_v62  ;;  %v709_v0 = vmul.f32 1.442695, %v706_v63 }
 0x37d   : > { %v724_v2 = vpop.permute.xlu0 %723 }
 0x37e   : > { %1800 = vpow2.f32 %v709_v0  ;;  %v730_v3 = vsel %vm728_vm7, %v724_v2, 0  ;;  %v1775_v0 = vld [vmem:[%s1997_s14 + $0x18] sm:$0xff]  }
 0x37f   : > { %1654 = vmatpush3.bf16.msra.mxu1 %v730_v3 }
 0x380   : > { %1665 = vmatprep.subr.bf16.mxu1 %v1897_v24 }
 0x386   : > { %v1799_v4 = vpop.eup %1798 }
 0x387   : > { %v711_v5 = vsel %vm698_vm5, %v1799_v4, 0.0 }
 0x388   : > { %v1801_v6 = vpop.eup %1800  ;;  %712 = vadd.xlane.f32.xlu1 %v711_v5 }
 0x389   : > { %v714_v7 = vsel %vm698_vm5, %v1801_v6, 0.0 }
 0x38c   : > { %715 = vadd.xlane.f32.xlu1 %v714_v7 }
 0x39d   : > { %876 = vrot.lane.b32.xlu1 %v630_v37, %s1900_s24 }
 0x3a1   : > { %874 = vrot.lane.b32.xlu1 %v644_v41, %s1901_s28 }
 0x415   : > { %v713_v10 = vpop.xlane.xlu1 %712 }
 0x416   : > { %1802 = vrcp.f32 %v713_v10 }
 0x419   : > { %v716_v11 = vpop.xlane.xlu1 %715 }
 0x41a   : > { %1804 = vrcp.f32 %v716_v11 }
 0x41d   : > { %v877_v21 = vpop.permute.xlu1 %876 }
 0x41e   : > { %v882_v26 = vsel %vm648_vm3, %v877_v21, 0 }
 0x420   : > { %v1803_v12 = vpop.eup %1802 }
 0x421   : > { %v719_v14 = vmul.f32 %v1803_v12, %v1799_v4  ;;  %v875_v27 = vpop.permute.xlu1 %874 }
 0x424   : > { %v1805_v13 = vpop.eup %1804 }
 0x425   : > { %v720_v15 = vmul.f32 %v1805_v13, %v1801_v6 }
 0x427   : > { %v721_v16 = vpack.c.bf16 %v720_v15, %v719_v14 }
 0x429   : > { %1656 = vmatmul.mubr.msk.bf16.vlgmr.msra.gmra.mrb[0].mxu1 %vm698_vm5, %v721_v16 }
 0x42a   : > { %1667 = vmatprep.mubr.msk.bf16.mxu1 %vm1898_vm2, %v1897_v24  ;;  %1666 = vmatpush3.bf16.msra.mxu1 %v1773_v17 }
 0x42b   : > { %1677 = vmatprep.subr.bf16.mxu1 %v1897_v24 }
 0x4fc   : > { %v766_v18 = vpop.f32.mrb[0].mxu1 }
 0x4fd   : > { %v773_v19 = vpack.c.bf16 %v766_v18, %v766_v18  ;;  %v1657_v20 = vpop.f32.mrb[1].mxu1 }
 0x4fe   : > { %v769_v22 = vpop.f32.mrb[2].mxu1 }
 0x4ff   : > { %v774_v23 = vpack.c.bf16 %v769_v22, %v769_v22  ;;  %v1658_v25 = vpop.f32.mrb[3].mxu1  ;;  %1668 = vmatmul.mubr.msk.bf16.vlgmr.msra.gmra.mrb[4].mxu1 %vm648_vm3, %v773_v19  ;;  %v1778_v22 = vld [vmem:[%s2002_s20 + $0x4] ss:$8 sps:$4 sm:$0xff]  }
 0x500   : > { %1679 = vmatprep.mubr.msk.bf16.mxu1 %vm1898_vm2, %v1897_v24  ;;  %v1781_v25 = vld [vmem:[%s2002_s20 + $0x14] ss:$8 sps:$4 sm:$0xff]  }
 0x501   : > { %1662 = vmatmul.mubr.msk.bf16.vlgmr.msra.gmra.mrb[8].mxu0 %vm648_vm3, %v774_v23  ;;  %v1776_v23 = vld [vmem:[%s2002_s20] ss:$8 sps:$4 sm:$0xff]  }
 0x502   : > { %1672 = vmatpush3.bf16.xpose.msra.mxu0 %v882_v26  ;;  %1673 = vmatprep.mubr.msk.bf16.mxu0 %vm1898_vm2, %v1897_v24  ;;  %v1779_v26 = vld [vmem:[%s2002_s20 + $0x10] ss:$8 sps:$4 sm:$0xff]  }
 0x503   : > { %1683 = vmatprep.subr.bf16.mxu0 %v1897_v24 }
 0x509   : > { %1674 = vmatmul.mubr.msk.bf16.vlgmr.msra.gmra.mrb[12].mxu0 %vm648_vm3, %v875_v27  ;;  %v1782_v27 = vld [vmem:[%s2002_s20 + $0x20] ss:$8 sps:$4 sm:$0xff]  }
 0x50a   : > { %1685 = vmatprep.mubr.msk.bf16.mxu0 %vm1898_vm2, %v1897_v24  ;;  %1684 = vmatpush3.bf16.msra.mxu0 %v1774_v57 }
 0x50b   : > { %1170 = vmatprep.subr.bf16.mxu0 %v1778_v22 }
 0x5d2   : > { %v867_v28 = vpop.f32.mrb[4].mxu1 }
 0x5d3   : > { %v1669_v29 = vpop.f32.mrb[5].mxu1 }
 0x5d4   : > { %v818_v30 = vpop.f32.mrb[8].mxu0  ;;  %v870_v31 = vpop.f32.mrb[6].mxu1  ;;  %v1787_v29 = vld [vmem:[%s2002_s20 + $0x34] ss:$8 sps:$4 sm:$0xff]  }
 0x5d5   : > { %v868_v32 = vadd.f32 %v867_v28, %v818_v30  ;;  %v1663_v33 = vpop.f32.mrb[9].mxu0  ;;  %v1670_v34 = vpop.f32.mrb[7].mxu1  ;;  %v1785_v28 = vld [vmem:[%s2002_s20 + $0x30] ss:$8 sps:$4 sm:$0xff]  }
 0x5d6   : > { %v821_v35 = vpop.f32.mrb[10].mxu0  ;;  %v1581_v34 = vld [vmem:[%s439_s25] ss:$0 sm:$0xff] }
 0x5d7   : > { %v1664_v36 = vpop.f32.mrb[11].mxu0 }
 0x5dc   : > { %v918_v37 = vpop.f32.mrb[12].mxu0 }
 0x5dd   : > { %v925_v38 = vsel %vm2047_vm4, %v918_v37, -1e+30  ;;  %v1675_v39 = vpop.f32.mrb[13].mxu0 }
 0x5de   : > { %v921_v40 = vpop.f32.mrb[14].mxu0  ;;  %v927_v41 = vsel %vm698_vm5, %v925_v38, -inf  ;;  %v1789_v39 = vld [vmem:[%s2007_s23 + $0x8] sm:$0xff]  }
 0x5df   : > { %v926_v42 = vsel %vm2051_vm6, %v921_v40, -1e+30  ;;  %928 = vmax.xlane.f32.xlu0 %v927_v41  ;;  %v1676_v43 = vpop.f32.mrb[15].mxu0  ;;  %v1790_v40 = vld [vmem:[%s2007_s23 + $0x10] sm:$0xff]   ;;  %v1791_v41 = vld [vmem:[%s2007_s23 + $0x18] sm:$0xff]  }
 0x5e0   : > { %v930_v44 = vsel %vm698_vm5, %v926_v42, -inf  ;;  %v1793_v43 = vld [vmem:[%s2007_s23 + $0x28] sm:$0xff]  }
 0x5e1   : > { %931 = vmax.xlane.f32.xlu1 %v930_v44  ;;  %v1794_v44 = vld [vmem:[%s2007_s23 + $0x30] sm:$0xff]  }
 0x5f2   : > { %950 = vrot.lane.b32.xlu1 %v2061_v58, %s1902_s22 }
 0x66c   : > { %v929_v45 = vpop.xlane.xlu0 %928 }
 0x66d   : > { %v933_v46 = vsub.f32 %v925_v38, %v929_v45  ;;  %v1788_v38 = vld [vmem:[%s2007_s23] sm:$0xff]   ;;  %v1795_v45 = vld [vmem:[%s2007_s23 + $0x38] sm:$0xff]  }
 0x66e   : > { %v932_v47 = vpop.xlane.xlu1 %931 }
 0x66f   : > { %v935_v48 = vmul.f32 1.442695, %v933_v46  ;;  %v934_v49 = vsub.f32 %v926_v42, %v932_v47  ;;  %v1792_v42 = vld [vmem:[%s2007_s23 + $0x20] sm:$0xff]  }
 0x671   : > { %1806 = vpow2.f32 %v935_v48  ;;  %v937_v51 = vmul.f32 1.442695, %v934_v49 }
 0x672   : > { %v951_v52 = vpop.permute.xlu1 %950 }
 0x673   : > { %1808 = vpow2.f32 %v937_v51  ;;  %v956_v50 = vsel %vm728_vm7, %v951_v52, 0 }
 0x674   : > { %1678 = vmatpush3.bf16.msra.mxu1 %v956_v50 }
 0x675   : > { %1689 = vmatprep.subr.bf16.mxu1 %v1897_v24 }
 0x67b   : > { %v1807_v53 = vpop.eup %1806 }
 0x67c   : > { %v939_v54 = vsel %vm698_vm5, %v1807_v53, 0.0 }
 0x67d   : > { %v1809_v55 = vpop.eup %1808  ;;  %940 = vadd.xlane.f32.xlu0 %v939_v54 }
 0x67e   : > { %v942_v56 = vsel %vm698_vm5, %v1809_v55, 0.0 }
 0x681   : > { %943 = vadd.xlane.f32.xlu0 %v942_v56 }
 0x70a   : > { %v941_v58 = vpop.xlane.xlu0 %940 }
 0x70b   : > { %1810 = vrcp.f32 %v941_v58 }
 0x70e   : > { %v944_v59 = vpop.xlane.xlu0 %943 }
 0x70f   : > { %1812 = vrcp.f32 %v944_v59 }
 0x715   : > { %v1811_v60 = vpop.eup %1810 }
 0x716   : > { %v947_v62 = vmul.f32 %v1811_v60, %v1807_v53 }
 0x719   : > { %v1813_v61 = vpop.eup %1812 }
 0x71a   : > { %v948_v63 = vmul.f32 %v1813_v61, %v1809_v55 }
 0x71c   : > { %v949_v2 = vpack.c.bf16 %v948_v63, %v947_v62  ;;  %v1820_v63 = vld [vmem:[%s2223_s9] sm:$0xff] (!%p1600_p5)  }
 0x71e   : > { %1680 = vmatmul.mubr.msk.bf16.vlgmr.msra.gmra.mrb[8].mxu1 %vm698_vm5, %v949_v2  ;;  %v1821_v2 = vld [vmem:[%s2223_s9 + $0x8] sm:$0xff] (!%p1600_p5)  }
 0x71f   : > { %1690 = vmatpush3.bf16.msra.mxu1 %v1775_v0  ;;  %1691 = vmatprep.mubr.msk.bf16.mxu1 %vm1898_vm2, %v1897_v24  ;;  %v1903_v0 = vmov (!%p1600_p5), 0.0  }
 0x720   : > { %1695 = vmatprep.subr.bf16.mxu1 %v1897_v24 }
 0x7f1   : > { %v992_v3 = vpop.f32.mrb[8].mxu1 }
 0x7f2   : > { %v999_v4 = vpack.c.bf16 %v992_v3, %v992_v3  ;;  %v1681_v5 = vpop.f32.mrb[9].mxu1  ;;  %v1822_v3 = vld [vmem:[%s2223_s9 + $0x10] sm:$0xff] (!%p1600_p5)  }
 0x7f3   : > { %v995_v6 = vpop.f32.mrb[10].mxu1 }
 0x7f4   : > { %v1050_v7 = vpack.c.bf16 %v995_v6, %v995_v6  ;;  %v1682_v8 = vpop.f32.mrb[11].mxu1  ;;  %1686 = vmatmul.mubr.msk.bf16.vlgmr.msra.gmra.mrb[16].mxu0 %vm648_vm3, %v999_v4  ;;  %v1823_v4 = vld [vmem:[%s2223_s9 + $0x18] sm:$0xff] (!%p1600_p5)  }
 0x7f5   : > { %1202 = vmatprep.mubr.bf16.mxu0 %v1894_v9  ;;  %1171 = vmatpush1.bf16.msra.mxu0 %v1776_v23 }
 0x7f6   : > { %1692 = vmatmul.mubr.msk.bf16.vlgmr.msra.gmra.mrb[12].mxu1 %vm648_vm3, %v1050_v7  ;;  %1172 = vmatprep.subr.bf16.mxu0 %v1781_v25 }
 0x7f7   : > { %1711 = vmatprep.mubr.msk.bf16.mxu1 %vm1898_vm2, %v1897_v24  ;;  %1696 = vmatpush3.bf16.msra.mxu1 %v1788_v38 }
 0x7f8   : > { %1697 = vmatprep.subr.bf16.mxu1 %v1897_v24 }
 0x7f9   : > { %1173 = vmatpush1.bf16.msra.mxu0 %v1779_v26 }
 0x7fb   : > { %1698 = vmatpush3.bf16.msra.mxu1 %v1789_v39 }
 0x7fc   : > { %1699 = vmatprep.subr.bf16.mxu1 %v1897_v24 }
 0x7ff   : > { %1700 = vmatpush3.bf16.msra.mxu1 %v1790_v40 }
 0x800   : > { %1701 = vmatprep.subr.bf16.mxu1 %v1897_v24 }
 0x803   : > { %1702 = vmatpush3.bf16.msra.mxu1 %v1791_v41 }
 0x804   : > { %1703 = vmatprep.subr.bf16.mxu1 %v1897_v24 }
 0x807   : > { %1704 = vmatpush3.bf16.msra.mxu1 %v1792_v42 }
 0x808   : > { %1705 = vmatprep.subr.bf16.mxu1 %v1897_v24 }
 0x80b   : > { %1706 = vmatpush3.bf16.msra.mxu1 %v1793_v43 }
 0x80c   : > { %1707 = vmatprep.subr.bf16.mxu1 %v1897_v24 }
 0x80f   : > { %1708 = vmatpush3.bf16.msra.mxu1 %v1794_v44 }
 0x810   : > { %1709 = vmatprep.subr.bf16.mxu1 %v1897_v24 }
 0x813   : > { %1710 = vmatpush3.bf16.msra.mxu1 %v1795_v45 }
 0x8c7   : > { %v1043_v10 = vpop.f32.mrb[16].mxu0 }
 0x8c8   : > { %v1049_v11 = vadd.f32 %v1043_v10, %v868_v32  ;;  %v1687_v12 = vpop.f32.mrb[17].mxu0  ;;  %v1601_v10 = vld [vmem:[%s2222_s8] ss:$0 sm:$0xff] (!%p1600_p5) }
 0x8c9   : > { %v1046_v13 = vpop.f32.mrb[18].mxu0  ;;  %v1094_v14 = vpop.f32.mrb[12].mxu1 }
 0x8ca   : > { %v1100_v15 = vadd.f32 %v1094_v14, %v1049_v11  ;;  %v1688_v16 = vpop.f32.mrb[19].mxu0  ;;  %v1693_v17 = vpop.f32.mrb[13].mxu1 }
 0x8cb   : > { %v1097_v9 = vpop.f32.mrb[14].mxu1 }
 0x8cc   : > { %v2110_v18 = vadd.f32 %v1100_v15, %v2013_v1  ;;  %v1694_v19 = vpop.f32.mrb[15].mxu1  ;;  %v1784_v1 = vld [vmem:[%s2002_s20 + $0x24] ss:$8 sps:$4 sm:$0xff]  }
 0x8cd   : > { %1174 = vmatprep.subr.bf16.mxu0 %v1784_v1 }
 0x8ce   : > { %v1102_v20 = vmul.f32 %v2110_v18, %v2110_v18  ;;  %1175 = vmatpush1.bf16.msra.mxu0 %v1782_v27 }
 0x8cf   : > { %1176 = vmatprep.subr.bf16.mxu0 %v1787_v29 }
 0x8d0   : > { %v1103_v21 = vsel %vm470_vm1, %v1102_v20, 0.0 }
 0x8d1   : > { %1104 = vadd.xlane.f32.xlu0 %v1103_v21 }
 0x8d2   : > { %1177 = vmatpush1.bf16.msra.mxu0 %v1785_v28 }
 0x8d3   : > { %1715 = vmatprep.subr.bf16.mxu0 (!%p1600_p5), %v1903_v0 }
 0x95e   : > { %v1105_v30 = vpop.xlane.xlu0 %1104 }
 0x95f   : > { %v1106_v31 = vmul.f32 0.015625, %v1105_v30 }
 0x961   : > { %v1107_v32 = vadd.f32 1e-06, %v1106_v31 }
 0x963   : > { %1814 = vrsqrt.f32 %v1107_v32 }
 0x96d   : > { %v1815_v33 = vpop.eup %1814 }
 0x96e   : > { %v1109_v35 = vmul.f32 %v1815_v33, %v2110_v18 }
 0x970   : > { %v1117_v36 = vmul.f32 %v1581_v34, %v1109_v35 }
 0x972   : > { %v1118_v37 = vpack.c.bf16 %v1117_v36, %v1117_v36 }
 0x974   : > { %1590 = vmatmul.mubr.msk.bf16.vlgmr.msra.gmra.mrb[20].mxu0 %vm470_vm1, %v1118_v37 }
 0x975   : > { %1716 = vmatpush3.bf16.msra.mxu0 (!%p1600_p5), %v1820_v63  ;;  %1723 = vmatprep.mubr.msk.bf16.mxu0 (!%p1600_p5), %vm1904_vm8, %v1903_v0 }
 0x976   : > { %1717 = vmatprep.subr.bf16.mxu0 (!%p1600_p5), %v1903_v0 }
 0x979   : > { %1718 = vmatpush3.bf16.msra.mxu0 (!%p1600_p5), %v1821_v2 }
 0x97a   : > { %1719 = vmatprep.subr.bf16.mxu0 (!%p1600_p5), %v1903_v0 }
 0x97d   : > { %1720 = vmatpush3.bf16.msra.mxu0 (!%p1600_p5), %v1822_v3 }
 0x97e   : > { %1721 = vmatprep.subr.bf16.mxu0 (!%p1600_p5), %v1903_v0 }
 0x981   : > { %1722 = vmatpush3.bf16.msra.mxu0 (!%p1600_p5), %v1823_v4 }
 0xa47   : > { %v1204_v46 = vpop.f32.mrb[20].mxu0 }
 0xa48   : > { %v1591_v47 = vmul.f32 -1.442695, %v1204_v46  ;;  %v1206_v48 = vpop.f32.mrb[21].mxu0 }
 0xa49   : > { %v1208_v49 = vpop.f32.mrb[22].mxu0 }
 0xa4a   : > { %1816 = vpow2.f32 %v1591_v47  ;;  %v1209_v51 = vpop.f32.mrb[23].mxu0 }
 0xa54   : > { %v1817_v52 = vpop.eup %1816 }
 0xa55   : > { %v1214_v50 = vadd.f32 1.0, %v1817_v52 }
 0xa57   : > { %1818 = vrcp.f32 %v1214_v50 }
 0xa61   : > { %v1819_v53 = vpop.eup %1818 }
 0xa62   : > { %v1217_v54 = vmul.f32 %v1819_v53, %v1204_v46 }
 0xa64   : > { %v1218_v55 = vmul.f32 %v1217_v54, %v1206_v48 }
 0xa66   : > { %v1219_v56 = vpack.c.bf16 %v1218_v55, %v1218_v55 }
 0xa68   : > { %1712 = vmatmul.mubr.bf16.vlgmr.msra.gmra.mrb[16].mxu1 %v1219_v56 }
 0xb38   : > { %1329 = sbr.rel (%p1600_p5) target bundleno = 3259 (0xcbb), region = 68 }
 0xb3b   : > { %v1318_v57 = vpop.f32.mrb[16].mxu1 }
 0xb3c   : > { %v1324_v58 = vadd.f32 %v1318_v57, %v2110_v18  ;;  %v1713_v24 = vpop.f32.mrb[17].mxu1 }
 0xb3d   : > { %v1321_v59 = vpop.f32.mrb[18].mxu1 }
 0xb3e   : > { %1325 = vst.msk [vmem:[#allocation2] sm:$0xff] %vm470_vm1, %v1324_v58  ;;  %v1714_v60 = vpop.f32.mrb[19].mxu1  ;;  %v1330_v61 = vmul.f32 (!%p1600_p5), %v1324_v58, %v1324_v58 }
 0xb40   : > { %v1331_v62 = vsel %vm470_vm1, %v1330_v61, 0.0 }
 0xb41   : > { %1332 = vadd.xlane.f32.xlu0 %v1331_v62 }
 0xbce   : > { %v1333_v5 = vpop.xlane.xlu0 %1332 }
 0xbcf   : > { %v1334_v6 = vmul.f32 0.015625, %v1333_v5 }
 0xbd1   : > { %v1335_v7 = vadd.f32 1e-06, %v1334_v6 }
 0xbd3   : > { %1824 = vrsqrt.f32 %v1335_v7 }
 0xbdd   : > { %v1825_v8 = vpop.eup %1824 }
 0xbde   : > { %v1337_v11 = vmul.f32 %v1825_v8, %v1324_v58 }
 0xbe0   : > { %v1345_v12 = vmul.f32 %v1601_v10, %v1337_v11 }
 0xbe2   : > { %1346 = vst.msk [vmem:[#allocation3] sm:$0xff] %vm470_vm1, %v1345_v12  ;;  %v1347_v13 = vpack.c.bf16 %v1345_v12, %v1345_v12 }
 0xbe4   : > { %1724 = vmatmul.mubr.msk.bf16.vlgmr.msra.gmra.mrb[0].mxu0 %vm470_vm1, %v1347_v13 }
 0xcb7   : > { %v1417_v14 = vpop.f32.mrb[0].mxu0 }
 0xcb8   : > { %1423 = vst [vmem:[#allocation5] sm:$0xff] %v1417_v14  ;;  %v1725_v15 = vpop.f32.mrb[1].mxu0 }
 0xcb9   : > { %v1420_v16 = vpop.f32.mrb[2].mxu0 }
 0xcba   : > { %v1726_v17 = vpop.f32.mrb[3].mxu0 }
 0xcbb PF: > { %p1735_p6 = scmp.eq.s32.totalorder %s1973_s18, 1  ;;  %s1905_s16 = smov [#allocation3]  }
 0xcbc   : > { %s1431_s21 = sshll.u32 %s1905_s16, 4  ;;  %s1906_s24 = smov [#allocation5]   ;;  %s1432_s21 = int_to_ptr.vmem [resolvable:$true] %s1431_s21 }
 0xcbd   : > { %s1442_s28 = sshll.u32 %s1906_s24, 4  ;;  %s1826_s22 = scalar_lea.vmem %s1432_s21, 128  ;;  %s1443_s28 = int_to_ptr.vmem [resolvable:$true] %s1442_s28 }
 0xcbe   : > { %p1827_p7 = scmp.ne.s32.totalorder %s1432_s21, %s1826_s22  ;;  %p1833_p10 = scmp.lt.s32.totalorder %s1432_s21, %s1432_s21 }
 0xcbf   : > { %p1834_p11 = scmp.lt.s32.totalorder %s1826_s22, %s1826_s22 }
 0xcc0   : > { %p1828_p8 = pnand %p1827_p7, %p1735_p6 }
 0xcc1   : > { %p1835_p12 = por %p1834_p11, %p1833_p10 }
 0xcc2   : > { %p1829_p9 = pneg %p1828_p8 }
 0xcc4   : > { %p1836_p13 = pnand %p1835_p12, %p1829_p9 }
 0xcc6   : > { %1839 = shalt.err (!%p1836_p13)
}
 0xcc7   : > { %s1840_s19 = scalar_lea.hbm %s2224_s10, 128 }
 0xcc8   : > { %p1841_p0 = scmp.ne.s32.totalorder %s2224_s10, %s1840_s19  ;;  %p1846_p3 = scmp.lt.u32.totalorder %s1840_s19, %s2224_s10 }
 0xcca   : > { %p1842_p1 = pnand %p1841_p0, %p1735_p6 }
 0xccc   : > { %p1843_p2 = pneg %p1842_p1 }
 0xcce   : > { %p1848_p4 = pnand %p1846_p3, %p1843_p2 }
 0xcd0   : > { %1851 = shalt.err (!%p1848_p4)
}
 0xcd1   : > { %1728 = dma.vmem_to_hbm [thread:$0]  (%p1735_p6), %s1432_s21, 128, %s2224_s10, [#allocation4]  }
 0xcd2   : > { %s1852_s13 = scalar_lea.vmem %s1443_s28, 128  ;;  %p1859_p9 = scmp.lt.s32.totalorder %s1443_s28, %s1443_s28 }
 0xcd3   : > { %p1853_p5 = scmp.ne.s32.totalorder %s1443_s28, %s1852_s13  ;;  %p1860_p10 = scmp.lt.s32.totalorder %s1852_s13, %s1852_s13 }
 0xcd5   : > { %p1854_p7 = pnand %p1853_p5, %p1735_p6  ;;  %p1861_p11 = por %p1860_p10, %p1859_p9 }
 0xcd7   : > { %p1855_p8 = pneg %p1854_p7 }
 0xcd9   : > { %p1862_p12 = pnand %p1861_p11, %p1855_p8 }
 0xcdb   : > { %1865 = shalt.err (!%p1862_p12)
}
 0xcdc   : > { %s1866_s16 = scalar_lea.hbm %s2225_s11, 128 }
 0xcdd   : > { %p1867_p13 = scmp.ne.s32.totalorder %s2225_s11, %s1866_s16  ;;  %p1872_p2 = scmp.lt.u32.totalorder %s1866_s16, %s2225_s11 }
 0xcdf   : > { %p1868_p0 = pnand %p1867_p13, %p1735_p6 }
 0xce1   : > { %p1869_p1 = pneg %p1868_p0 }
 0xce3   : > { %p1874_p3 = pnand %p1872_p2, %p1869_p1 }
 0xce5   : > { %1877 = shalt.err (!%p1874_p3)
}
 0xce6   : > { %1730 = dma.vmem_to_hbm [thread:$0]  (%p1735_p6), %s1443_s28, 128, %s2225_s11, [#allocation6]  }
 0xce7   : > { %1883 = dma.done.wait (%p1735_p6), [#allocation4], 128  }
 0xce8   : > { %1885 = vsyncadd (%p1735_p6), [#allocation4], 4294967168 }
 0xce9   : > { %1887 = dma.done.wait (%p1735_p6), [#allocation6], 128  }
 0xcea   : > { %1889 = vsyncadd (%p1735_p6), [#allocation6], 4294967168 }
 0xceb PF: > { %s24_s17 = sadd.s32 1, %s1892_s17  }
 0xcec   : > { %p21_p4 = scmp.ge.s32.totalorder %s24_s17, 4  }
 0xcee   :  { %23 = sbr.rel (!%p21_p4) target bundleno = 2 (0x2), region = 118 }
 0xcf5   :  { %1459 = vsyncpa [#allocation4], 1 }
 0xcf6   :  { %1461 = vsyncpa [#allocation4 + $0x1], 1 }
 0xcf7   :  { %1462 = vsyncpa [#allocation6], 1 }

</bundles_post_ra>
